<compile_context>
chip_gen: v7x
topology: tpu7x:2x2x1
jax: 0.10.0
libtpu: 0.0.40
codegen_flags: <defaults>
</compile_context>

<pallas_src>
import jax
import jax.numpy as jnp
from jax.experimental import pallas as pl
from jax.experimental.pallas import tpu as pltpu


def _tpu_budget():
    """(vmem_capacity_bytes, tensorcores_per_chip) with safe fallbacks."""
    vmem = 128 << 20
    try:
        info = pltpu.get_tpu_info()
        v = getattr(info, "vmem_capacity_bytes", None)
        if v:
            vmem = int(v)
    except Exception:
        pass
    # v7x exposes ~64 MiB VMEM per TensorCore and has 2 TCs/chip; v5e/v6e have
    # 128 MiB and a single TC.
    num_cores = 2 if vmem <= (80 << 20) else 1
    return vmem, num_cores


def _choose_chunk(S):
    """Lane-chunk for the in-kernel S reduction: >=512 lanes, <=16 chunks."""
    if S <= 512:
        return S
    chunk = max(512, -(-S // 16))          # keep the static unroll short
    chunk = -(-chunk // 128) * 128         # multiple of 128 (lane-aligned)
    return min(chunk, S)


def _pick_tiles(B, N, S, x_itemsize, target_x_tile_bytes, num_cores):
    """Choose (TB, TN): x tile ~= target bytes, (8,128)-legal output block."""
    # Neuron tile: full N when small (block == full dim is always legal),
    # otherwise a multiple of 128 so the output block is lane-dense.
    TN = N if N <= 512 else 256
    n_tiles = pl.cdiv(N, TN)

    row_bytes = max(1, TN * S * x_itemsize)
    rows = max(1, target_x_tile_bytes // row_bytes)
    if rows >= B or B <= 8:
        TB = B
    else:
        TB = min(max(8, (rows // 8) * 8), (B // 8) * 8)

    # v7x has 2 TensorCores: make sure any non-trivial problem has >= 2
    # parallel grid tiles so both cores get work and the pipeline runs.
    total_x_bytes = B * N * S * x_itemsize
    if (num_cores >= 2 and n_tiles * pl.cdiv(B, TB) < 2
            and B >= 16 and total_x_bytes > (2 << 20)):
        TB = ((pl.cdiv(B, 2) + 7) // 8) * 8
    return TB, TN


def _tile_vmem_usage(TB, TN, S, x_isz, w_isz, b_isz, x_buffers, chunk):
    """Real VMEM footprint: pipelined buffers + in-kernel f32 temporaries."""
    x_tile = TB * TN * S * x_isz
    w_tile = TN * S * w_isz
    b_tile = TN * b_isz
    o_tile = TB * TN * 4
    bufs = x_buffers * x_tile + 2 * (w_tile + b_tile + o_tile)
    # f32 accumulator + ~2 live chunk-sized products during the reduce.
    temps = TB * TN * 4 + 2 * TB * TN * min(S, chunk) * 4
    return bufs + temps


def _maybe_buffered_spec(block_shape, index_map, buffer_count):
    """BlockSpec with optional >2-deep pipelining (falls back if unsupported)."""
    if buffer_count and buffer_count > 2:
        try:
            return pl.BlockSpec(block_shape, index_map,
                                pipeline_mode=pl.Buffered(buffer_count))
        except TypeError:
            pass
    return pl.BlockSpec(block_shape, index_map)


def _make_kernel(S, chunk):
    def _partial_sum(xc, wc):
        # VPU elementwise multiply in the native (possibly bf16) dtype, then a
        # single XLU lane reduction accumulated in f32.
        p = xc * wc[None, :, :]
        return jnp.sum(p.astype(jnp.float32), axis=-1)

    def kernel(x_ref, w_ref, b_ref, o_ref):
        # x_ref: (TB, TN, S), w_ref: (TN, S), b_ref: (1, TN), o_ref: (TB, TN)
        if S <= chunk:
            acc = _partial_sum(x_ref[...], w_ref[...])
        else:
            # Statically-unrolled chunked reduction over S: never materializes
            # the full (TB, TN, S) f32 product; static starts -> plain aligned
            # vector loads, no dynamic lane-dim slicing.
            acc = None
            for s0 in range(0, S, chunk):
                sz = min(chunk, S - s0)
                p = _partial_sum(x_ref[:, :, s0:s0 + sz], w_ref[:, s0:s0 + sz])
                acc = p if acc is None else acc + p
        o_ref[...] = (acc + b_ref[...].astype(jnp.float32)).astype(o_ref.dtype)

    return kernel


def single_sample_linear(x, w, b, *, target_x_tile_bytes=None,
                         x_buffer_count=None):
    """x: (B, N, S), w: (N, S), b: (N,) -> (B, N) float32."""
    B, N, S = x.shape
    assert w.shape == (N, S)
    assert b.shape == (N,)
    b2d = b.reshape(1, N)

    x_isz = x.dtype.itemsize
    w_isz = w.dtype.itemsize
    b_isz = b.dtype.itemsize

    vmem_cap, num_cores = _tpu_budget()
    if target_x_tile_bytes is None:
        # Generation-aware: v7x (64 MiB/TC, fast HBM) -> 8 MiB; v5e/v6e -> 12 MiB.
        target_x_tile_bytes = (8 << 20) if vmem_cap <= (80 << 20) else (12 << 20)

    TB, TN = _pick_tiles(B, N, S, x_isz, target_x_tile_bytes, num_cores)
    n_tiles = pl.cdiv(N, TN)
    chunk = _choose_chunk(S)

    if x_buffer_count is None:
        # 3-deep x pipeline only where it pays off (v7x-class, multi-tile grid).
        x_buffer_count = 3 if (num_cores >= 2
                               and n_tiles * pl.cdiv(B, TB) >= 3) else 2
    x_buffer_count = max(2, int(x_buffer_count))

    # VMEM budget: ~75% of physical per-core VMEM, capped at 100 MiB.
    vmem_budget = min(int(0.75 * vmem_cap), 100 << 20)

    def _usage(tb):
        return _tile_vmem_usage(tb, TN, S, x_isz, w_isz, b_isz,
                                x_buffer_count, chunk)

    # Clamp TB so buffers + in-kernel temporaries actually fit the budget.
    while TB > 8 and _usage(TB) > vmem_budget:
        TB = max(8, (((TB // 2) + 7) // 8) * 8)

    b_tiles = pl.cdiv(B, TB)
    vmem_limit = int(max(32 << 20, min(_usage(TB) + (8 << 20), vmem_budget)))

    cost = pl.CostEstimate(
        flops=2 * B * N * S,
        bytes_accessed=(B * N * S * x_isz + N * S * w_isz
                        + N * b_isz + B * N * 4),
        transcendentals=0,
    )

    kernel = _make_kernel(S, chunk)

    return pl.pallas_call(
        kernel,
        out_shape=jax.ShapeDtypeStruct((B, N), jnp.float32),
        # Neurons outer, batch inner: W/bias block indices are constant across
        # the inner (batch) axis, so weights are fetched once per neuron tile.
        grid=(n_tiles, b_tiles),
        in_specs=[
            _maybe_buffered_spec((TB, TN, S), lambda j, i: (i, j, 0),
                                 x_buffer_count),                      # x
            pl.BlockSpec((TN, S), lambda j, i: (j, 0)),                # W
            pl.BlockSpec((1, TN), lambda j, i: (0, j)),                # bias
        ],
        out_specs=pl.BlockSpec((TB, TN), lambda j, i: (i, j)),
        compiler_params=pltpu.CompilerParams(
            dimension_semantics=("parallel", "parallel"),
            vmem_limit_bytes=vmem_limit,
        ),
        cost_estimate=cost,
    )(x, w, b2d)


def _reference(x, w, b):
    return (jnp.einsum("bns,ns->bn", x.astype(jnp.float32),
                       w.astype(jnp.float32))
            + b.astype(jnp.float32)[None, :])


if __name__ == "__main__":
    key = jax.random.PRNGKey(0)

    # Small shapes consistent with the module: batch=2, num_neurons=4, seq=8.
    batch, num_neurons, seq_len = 2, 4, 8
    kx, kw, kb, key = jax.random.split(key, 4)
    x = jax.random.normal(kx, (batch, num_neurons, seq_len), dtype=jnp.float32)
    bound = 1.0 / float(seq_len) ** 0.5
    w = jax.random.uniform(kw, (num_neurons, seq_len), jnp.float32,
                           minval=-bound, maxval=bound)
    b = jax.random.uniform(kb, (num_neurons,), jnp.float32,
                           minval=-bound, maxval=bound)

    out = jax.block_until_ready(single_sample_linear(x, w, b))
    ref = _reference(x, w, b)
    assert out.shape == (batch, num_neurons)
    assert jnp.allclose(out, ref, atol=1e-5, rtol=1e-5)

    # Second check: bf16 inputs, tiled/pipelined batch axis, and the chunked
    # S-reduction path (2 full chunks + a remainder chunk).
    B2, N2, S2 = 64, 8, 1280
    kx2, kw2, kb2, key = jax.random.split(key, 4)
    x2 = jax.random.normal(kx2, (B2, N2, S2), dtype=jnp.bfloat16)
    w2 = (jax.random.normal(kw2, (N2, S2), dtype=jnp.float32) * 0.05
          ).astype(jnp.bfloat16)
    b2 = jax.random.normal(kb2, (N2,), dtype=jnp.float32) * 0.05
    out2 = jax.block_until_ready(
        single_sample_linear(x2, w2, b2, target_x_tile_bytes=160 << 10))
    ref2 = _reference(x2, w2, b2)
    assert out2.shape == (B2, N2)
    assert jnp.allclose(out2, ref2, atol=5e-2, rtol=5e-2)

    print("KERNEL_OK")
</pallas_src>

<mosaic_0001>
module attributes {stable_mosaic.version = 11 : i64} {
  func.func @kernel(%arg0: i32, %arg1: i32, %arg2: memref<2x4x8xf32, #tpu.memory_space<vmem>>, %arg3: memref<4x8xf32, #tpu.memory_space<vmem>>, %arg4: memref<1x4xf32, #tpu.memory_space<vmem>>, %arg5: memref<2x4xf32, #tpu.memory_space<vmem>>) attributes {dimension_semantics = [#tpu.dimension_semantics<parallel>, #tpu.dimension_semantics<parallel>], iteration_bounds = array<i64: 1, 1>, scalar_prefetch = 0 : i64, scratch_operands = 0 : i64, tpu.core_type = #tpu.core_type<tc>, window_params = [{transform_indices = @transform_0, window_bounds = array<i64: 2, 4, 8>}, {transform_indices = @transform_1, window_bounds = array<i64: 4, 8>}, {transform_indices = @transform_2, window_bounds = array<i64: 1, 4>}, {transform_indices = @transform_3, window_bounds = array<i64: 2, 4>}]} {
    %c0 = arith.constant 0 : index
    %c0_0 = arith.constant 0 : index
    %c0_1 = arith.constant 0 : index
    %0 = vector.load %arg2[%c0, %c0_0, %c0_1] : memref<2x4x8xf32, #tpu.memory_space<vmem>>, vector<2x4x8xf32>
    %c0_2 = arith.constant 0 : index
    %c0_3 = arith.constant 0 : index
    %1 = vector.load %arg3[%c0_2, %c0_3] : memref<4x8xf32, #tpu.memory_space<vmem>>, vector<4x8xf32>
    %2 = vector.shape_cast %1 : vector<4x8xf32> to vector<1x4x8xf32>
    %3 = vector.broadcast %2 : vector<1x4x8xf32> to vector<2x4x8xf32>
    %4 = arith.mulf %0, %3 : vector<2x4x8xf32>
    %cst = arith.constant dense<0.000000e+00> : vector<2x4xf32>
    %5 = vector.multi_reduction <add>, %4, %cst [2] : vector<2x4x8xf32> to vector<2x4xf32>
    %c0_4 = arith.constant 0 : index
    %c0_5 = arith.constant 0 : index
    %6 = vector.load %arg4[%c0_4, %c0_5] : memref<1x4xf32, #tpu.memory_space<vmem>>, vector<1x4xf32>
    %7 = vector.broadcast %6 : vector<1x4xf32> to vector<2x4xf32>
    %8 = arith.addf %5, %7 : vector<2x4xf32>
    %c0_6 = arith.constant 0 : index
    %c0_7 = arith.constant 0 : index
    %9 = vector.load %arg5[%c0_6, %c0_7] : memref<2x4xf32, #tpu.memory_space<vmem>>, vector<2x4xf32>
    tpu.vector_store %arg5[%c0_6, %c0_7], %8 {strides = array<i32>} : memref<2x4xf32, #tpu.memory_space<vmem>>, vector<2x4xf32>,
    return
  }
  func.func @transform_0(%arg0: i32, %arg1: i32) -> (i32, i32, i32) {
    %c0_i32 = arith.constant 0 : i32
    %c0_i32_0 = arith.constant 0 : i32
    return %arg1, %arg0, %c0_i32 : i32, i32, i32
  }
  func.func @transform_1(%arg0: i32, %arg1: i32) -> (i32, i32) {
    %c0_i32 = arith.constant 0 : i32
    %c0_i32_0 = arith.constant 0 : i32
    return %arg0, %c0_i32 : i32, i32
  }
  func.func @transform_2(%arg0: i32, %arg1: i32) -> (i32, i32) {
    %c0_i32 = arith.constant 0 : i32
    %c0_i32_0 = arith.constant 0 : i32
    return %c0_i32, %arg0 : i32, i32
  }
  func.func @transform_3(%arg0: i32, %arg1: i32) -> (i32, i32) {
    %c0_i32 = arith.constant 0 : i32
    return %arg1, %arg0 : i32, i32
  }
}

</mosaic_0001>

<bundles_post_ra>
// kernel: tpu_custom_call.1
= control target key start
LH: loop header
LB: loop body
LE: loop exit
PB: predicated region body
PF: predicated region fallthrough
CT: control target
= control target key end

     0   :  { %8 = vsyncpa [#allocation3], 0  ;;  %s250_s0 = inlined_call_operand.hbm [shape: f32[2,4,8], index: 0, kind: input, shape index: {}]   ;;  %s251_s1 = inlined_call_operand.hbm [shape: f32[4,8], index: 1, kind: input, shape index: {}]   ;;  %s252_s2 = inlined_call_operand.vmem [shape: f32[1,4], index: 2, kind: input, shape index: {}]   ;;  %s253_s3 = inlined_call_operand.hbm [shape: f32[2,4], index: 3, kind: output, shape index: {}]  }
   0x1   :  { %9 = vsyncpa [#allocation6], 0 }
   0x2   :  { %10 = vsyncpa [#allocation4], 0  ;;  %s185_s12 = smov [#allocation2]   ;;  %s113_s16 = scalar_lea.hbm %s250_s0, 128 }
   0x3   :  { %s16_s13 = sshll.u32 %s185_s12, 4  ;;  %p114_p0 = scmp.ne.s32.totalorder %s250_s0, %s113_s16  ;;  %s17_s13 = int_to_ptr.vmem [resolvable:$true] %s16_s13 }
   0x4   :  { %p117_p1 = scmp.lt.u32.totalorder %s113_s16, %s250_s0 }
   0x6   :  { %p119_p2 = pnand %p117_p1, %p114_p0 }
   0x8   :  { %122 = shalt.err (!%p119_p2)
}
   0x9   :  { %s123_s21 = scalar_lea.vmem %s17_s13, 128  ;;  %p128_p4 = scmp.lt.s32.totalorder %s17_s13, %s17_s13 }
   0xa   :  { %p124_p3 = scmp.ne.s32.totalorder %s17_s13, %s123_s21  ;;  %p129_p5 = scmp.lt.s32.totalorder %s123_s21, %s123_s21 }
   0xc   :  { %p130_p6 = por %p129_p5, %p128_p4 }
   0xe   :  { %p131_p7 = pnand %p130_p6, %p124_p3 }
  0x10   :  { %134 = shalt.err (!%p131_p7)
}
  0x11   :  { %s186_s22 = smov 64   ;;  %s187_s23 = smov 4  }
  0x12   :  { %22 = dma.hbm_to_vmem [thread:$0]  %s250_s0, 128, %s17_s13, [#allocation3], %s186_s22, %s186_s22, %s187_s23  }
  0x13   :  { %s188_s26 = smov [#allocation5]   ;;  %s135_s30 = scalar_lea.hbm %s251_s1, 64 }
  0x14   :  { %s29_s27 = sshll.u32 %s188_s26, 4  ;;  %p136_p8 = scmp.ne.s32.totalorder %s251_s1, %s135_s30  ;;  %s30_s27 = int_to_ptr.vmem [resolvable:$true] %s29_s27 }
  0x15   :  { %p139_p9 = scmp.lt.u32.totalorder %s135_s30, %s251_s1 }
  0x17   :  { %p141_p10 = pnand %p139_p9, %p136_p8 }
  0x19   :  { %144 = shalt.err (!%p141_p10)
}
  0x1a   :  { %s145_s8 = scalar_lea.vmem %s30_s27, 64  ;;  %p150_p12 = scmp.lt.s32.totalorder %s30_s27, %s30_s27 }
  0x1b   :  { %p146_p11 = scmp.ne.s32.totalorder %s30_s27, %s145_s8  ;;  %p151_p13 = scmp.lt.s32.totalorder %s145_s8, %s145_s8 }
  0x1d   :  { %p152_p0 = por %p151_p13, %p150_p12 }
  0x1f   :  { %p153_p1 = pnand %p152_p0, %p146_p11 }
  0x21   :  { %156 = shalt.err (!%p153_p1)
}
  0x22   :  { %32 = dma.hbm_to_vmem [thread:$0]  %s251_s1, 64, %s30_s27, [#allocation6]  }
  0x23   :  { %179 = dma.done.wait [#allocation3], 128  }
  0x24   :  { %180 = vsyncadd [#allocation3], 4294967168 }
  0x25   :  { %181 = dma.done.wait [#allocation6], 64  }
  0x26   :  { %182 = vsyncadd [#allocation6], 4294967232  ;;  %vm46_vm0 = vcmask 60416   ;;  %v41_v0 = vld [vmem:[#allocation2] sm:$0xf]  ;;  %v189_v8 = vmov 0   ;;  %v73_v14 = vlaneseq }
  0x27   :  { %v43_v1 = vld [vmem:[#allocation5] sm:$0xf]  ;;  %v42_v2 = vld [vmem:[#allocation2 + $0x4] sm:$0xf]  ;;  %v104_v5 = vld [vmem:[%s252_s2] ss:$0 sm:$0xff]  ;;  %111 = vset.pattern.permute.xlu1 %v189_v8  ;;  %112 = vset.pattern.permute.xlu0 %v189_v8 }
  0x28   :  { %v44_v3 = vmul.f32 %v43_v1, %v41_v0  ;;  %v45_v4 = vmul.f32 %v43_v1, %v42_v2  ;;  %60 = vbcast.lane.b32.xlu1 %v104_v5, 256  ;;  %v74_v15 = vand.u32 127, %v73_v14  ;;  %v76_v16 = vshrl.u32 %v73_v14, 7  ;;  %s190_s1 = smov [#allocation7]  }
  0x29   :  { %s94_s2 = sshll.u32 %s190_s1, 4  ;;  %vm83_vm1 = vcmask 1041409   ;;  %vm86_vm2 = vcmask 25600   ;;  %s95_s2 = int_to_ptr.vmem [resolvable:$true] %s94_s2 }
  0x2a   :  { %v47_v6 = vsel %vm46_vm0, %v44_v3, 0.0  ;;  %v50_v7 = vsel %vm46_vm0, %v45_v4, 0.0  ;;  %v77_v17 = vsub.s32 %v74_v15, %v76_v16  ;;  %s157_s12 = scalar_lea.vmem %s95_s2, 32  ;;  %p162_p3 = scmp.lt.s32.totalorder %s95_s2, %s95_s2 }
  0x2b   :  { %48 = vadd.xlane.f32.xlu0 %v47_v6  ;;  %p158_p2 = scmp.ne.s32.totalorder %s95_s2, %s157_s12  ;;  %p163_p4 = scmp.lt.s32.totalorder %s157_s12, %s157_s12 }
  0x2d   :  { %p164_p5 = por %p163_p4, %p162_p3 }
  0x2f   :  { %51 = vadd.xlane.f32.xlu0 %v50_v7  ;;  %p165_p6 = pnand %p164_p5, %p158_p2 }
  0x9a   :  { %v61_v9 = vpop.permute.xlu1 %60 }
  0xb8   :  { %v49_v10 = vpop.xlane.xlu0 %48 }
  0xb9   :  { %v63_v11 = vadd.f32 %v61_v9, %v49_v10 }
  0xbb   :  { %68 = vperm.xlu1 %111, %v63_v11  }
  0xbc   :  { %v52_v12 = vpop.xlane.xlu0 %51 }
  0xbd   :  { %v64_v13 = vadd.f32 %v61_v9, %v52_v12 }
  0xbf   :  { %71 = vperm.xlu0 %112, %v64_v13  }
 0x13a   :  { %v69_v18 = vpop.permute.xlu1 %68 }
 0x13b   :  { %v78_v20 = vrot.slane %v69_v18, %v77_v17 }
 0x13e   :  { %v72_v19 = vpop.permute.xlu0 %71 }
 0x13f   :  { %v82_v21 = vrot.slane %v72_v19, %v77_v17 }
 0x141   :  { %v84_v22 = vsel %vm83_vm1, %v82_v21, %v78_v20 }
 0x142   :  { %87 = vst.msk [vmem:[#allocation7] sm:$0x3] %vm86_vm2, %v84_v22 }
 0x143   :  { %168 = shalt.err (!%p165_p6)
}
 0x144   :  { %s169_s15 = scalar_lea.hbm %s253_s3, 32 }
 0x145   :  { %p170_p7 = scmp.ne.s32.totalorder %s253_s3, %s169_s15  ;;  %p173_p8 = scmp.lt.u32.totalorder %s169_s15, %s253_s3 }
 0x147   :  { %p175_p9 = pnand %p173_p8, %p170_p7 }
 0x149   :  { %178 = shalt.err (!%p175_p9)
}
 0x14a   :  { %97 = dma.vmem_to_hbm [thread:$0]  %s95_s2, 32, %s253_s3, [#allocation4]  }
 0x14b   :  { %183 = dma.done.wait [#allocation4], 32  }
 0x14c   :  { %184 = vsyncadd [#allocation4], 4294967264 }
 0x14d   :  { %101 = vsyncpa [#allocation3], 1 }
 0x14e   :  { %102 = vsyncpa [#allocation6], 1 }
 0x14f   :  { %103 = vsyncpa [#allocation4], 1 }

</bundles_post_ra>
